<compile_context>
chip_gen: v6e
topology: v6e:2x2x1
jax: 0.10.0
libtpu: 0.0.40
codegen_flags: <defaults>
</compile_context>

<pallas_src>
import functools

import jax
import jax.numpy as jnp
import numpy as np
from jax.experimental import pallas as pl
from jax.experimental.pallas import tpu as pltpu


# --------------------------------------------------------------------------- #
# Host-side packing: phase decomposition of ConvTranspose2d(k=4, s=2, p=1).
#
# out[n, co, 2y+dy, 2x+dx] =
#   sum_{a,b in {0,1}} sum_ci  in[n, ci, y+u, x+v] * w[ci, co, 3-dy-2a, 3-dx-2b]
# with u = a-1+dy, v = b-1+dx and zero padding for out-of-range (y+u, x+v).
# --------------------------------------------------------------------------- #
_UV = [(u, v) for u in (-1, 0, 1) for v in (-1, 0, 1)]   # uv index = (u+1)*3+(v+1)


def _shift_matrix(h, w, n_batch):
    """0/1 matrix mapping a (C, N*h*w) activation (lane = n*h*w + y*w + x) to its
    nine (u, v)-shifted, zero-padded copies stacked along lanes."""
    L = n_batch * h * w
    q = np.zeros((L, 9 * L), np.float32)
    for uvi, (u, v) in enumerate(_UV):
        for n in range(n_batch):
            for y in range(h):
                for x in range(w):
                    ys, xs = y + u, x + v
                    if 0 <= ys < h and 0 <= xs < w:
                        q[n * h * w + ys * w + xs,
                          uvi * L + n * h * w + y * w + x] = 1.0
    return q


def _shift_matrix_phase_src(h, w, n_batch):
    """Like _shift_matrix, but sources are in the phase-stacked layout produced by
    the previous stride-2 stage: lane = p*(N*h*w/4) + n*(h*w/4) + (y//2)*(w/2) + x//2,
    p = (y%2)*2 + (x%2)."""
    hq, wq = h // 2, w // 2
    lsrc_blk = n_batch * hq * wq
    ldst = n_batch * h * w
    q = np.zeros((4 * lsrc_blk, 9 * ldst), np.float32)
    for uvi, (u, v) in enumerate(_UV):
        for n in range(n_batch):
            for y in range(h):
                for x in range(w):
                    ys, xs = y + u, x + v
                    if 0 <= ys < h and 0 <= xs < w:
                        p = (ys % 2) * 2 + (xs % 2)
                        src = p * lsrc_blk + n * hq * wq + (ys // 2) * wq + (xs // 2)
                        q[src, uvi * ldst + n * h * w + y * w + x] = 1.0
    return q


def _pack_phase_weights(w):
    """ConvTranspose2d weight (Cin, Cout, 4, 4) -> (4*Cout, 9*Cin) GEMM operand:
    row = phase*Cout + co, col = uv_index*Cin + ci."""
    cin, cout = w.shape[0], w.shape[1]
    wb = np.zeros((4 * cout, 9 * cin), np.float32)
    for dy in range(2):
        for dx in range(2):
            p = dy * 2 + dx
            for a in range(2):
                for b in range(2):
                    u, v = a - 1 + dy, b - 1 + dx
                    uvi = (u + 1) * 3 + (v + 1)
                    ky, kx = 3 - dy - 2 * a, 3 - dx - 2 * b
                    wb[p * cout:(p + 1) * cout,
                       uvi * cin:(uvi + 1) * cin] = w[:, :, ky, kx].T
    return wb


# --------------------------------------------------------------------------- #
# Fused Pallas kernel: whole generator forward, everything VMEM-resident.
# Activation layout: (channels, batch*spatial) -> lane-dense GEMMs and store.
# --------------------------------------------------------------------------- #
def _dcgan_fused_kernel(xt_ref, w1l_ref, q1_ref, w2_ref, q2_ref, w3_ref, o_ref,
                        *, n_batch, nz, c1, c2):
    l1 = n_batch * 16           # lanes after the 4x4 initial convt
    l2 = n_batch * 64           # lanes after the 8x8 pyramid convt

    # ---- initial: ConvTranspose2d(nz, c1, 4, 1, 0) on 1x1 latents + ReLU (VPU)
    # h1[c, n*16 + y*4 + x] = sum_ci w1[ci, c, y, x] * z[n, ci]
    xt = xt_ref[...]                                         # (nz, N)
    blocks = []
    for n in range(n_batch):
        acc = jnp.zeros((c1, 16), jnp.float32)
        for ci in range(nz):
            acc = acc + w1l_ref[ci] * xt[ci:ci + 1, n:n + 1]
        blocks.append(acc)
    h1 = jnp.maximum(jnp.concatenate(blocks, axis=1), 0.0)   # (c1, N*16)

    # ---- pyramid: ConvTranspose2d(c1, c2, 4, 2, 1) + ReLU, phase decomposed (MXU)
    t2 = jnp.dot(h1, q1_ref[...], preferred_element_type=jnp.float32)      # (c1, 9*l1)
    t2r = jnp.concatenate([t2[:, k * l1:(k + 1) * l1] for k in range(9)], axis=0)
    h2p = jnp.maximum(
        jnp.dot(w2_ref[...], t2r, preferred_element_type=jnp.float32), 0.0)  # (4*c2, l1)
    h2 = jnp.concatenate([h2p[p * c2:(p + 1) * c2, :] for p in range(4)], axis=1)  # (c2, 4*l1)

    # ---- final: ConvTranspose2d(c2, nc, 4, 2, 1) + Tanh, phase decomposed (MXU)
    t3 = jnp.dot(h2, q2_ref[...], preferred_element_type=jnp.float32)      # (c2, 9*l2)
    t3r = jnp.concatenate([t3[:, k * l2:(k + 1) * l2] for k in range(9)], axis=0)
    y3 = jnp.dot(w3_ref[...], t3r, preferred_element_type=jnp.float32)     # (4*nc, l2)
    o_ref[...] = jnp.tanh(y3)


def dcgan_g_nobn_forward(x_nchw, packed):
    """x_nchw: (N, nz, 1, 1) latent -> (N, nc, 16, 16) image, NCHW."""
    w1l, q1, w2b, q2, w3b = packed
    n, nz = x_nchw.shape[0], x_nchw.shape[1]
    c1 = w1l.shape[1]
    c2 = w3b.shape[1] // 9
    nc = w3b.shape[0] // 4

    xt = x_nchw.reshape(n, nz).T                             # (nz, N)
    kernel = functools.partial(_dcgan_fused_kernel,
                               n_batch=n, nz=nz, c1=c1, c2=c2)
    vmem = pl.BlockSpec(memory_space=pltpu.MemorySpace.VMEM)
    out = pl.pallas_call(
        kernel,
        out_shape=jax.ShapeDtypeStruct((4 * nc, n * 64), jnp.float32),
        in_specs=[vmem] * 6,
        out_specs=vmem,
    )(xt, w1l, q1, w2b, q2, w3b)

    # (phase, co) x (n, y, x)  ->  NCHW with output phases interleaved back.
    out = out.reshape(2, 2, nc, n, 8, 8)          # (dy, dx, co, n, y, x)
    out = out.transpose(3, 2, 4, 0, 5, 1)         # (n, co, y, dy, x, dx)
    return out.reshape(n, nc, 16, 16)


# --------------------------------------------------------------------------- #
# Parameter construction (mirrors DCGAN_G_nobn.__init__, n_extra_layers=0).
# --------------------------------------------------------------------------- #
def build_params(key, isize, nz, nc, ngf, batch):
    assert isize % 16 == 0, "isize has to be a multiple of 16"
    cngf, tisize = ngf // 2, 4
    while tisize != isize:
        cngf *= 2
        tisize *= 2
    cfgs = [(nz, cngf)]
    csize, c = 4, cngf
    while csize < isize // 2:
        cfgs.append((c, c // 2))
        c //= 2
        csize *= 2
    cfgs.append((c, nc))
    # The fused kernel is instantiated for the isize=16 pipeline:
    # 1x1 -> 4x4 -> 8x8 -> 16x16 (initial + one pyramid + final convt).
    assert len(cfgs) == 3, "fused kernel is specialized to isize == 16"

    keys = jax.random.split(key, len(cfgs))
    raw = tuple(0.02 * jax.random.normal(k, (ci, co, 4, 4), jnp.float32)
                for k, (ci, co) in zip(keys, cfgs))
    w1, w2, w3 = (np.asarray(w) for w in raw)

    packed = (
        jnp.asarray(w1.reshape(nz, cngf, 16)),               # w1 as (ci, co, y*4+x)
        jnp.asarray(_shift_matrix(4, 4, batch)),             # Q1: (N*16, 9*N*16)
        jnp.asarray(_pack_phase_weights(w2)),                # (4*c2, 9*c1)
        jnp.asarray(_shift_matrix_phase_src(8, 8, batch)),   # Q2: (4*N*16, 9*N*64)
        jnp.asarray(_pack_phase_weights(w3)),                # (4*nc, 9*c2)
    )
    return raw, packed


# --------------------------------------------------------------------------- #
# Pure-JAX reference (ConvTranspose2d == dilated conv with flipped kernel).
# --------------------------------------------------------------------------- #
def _convt_ref(x, w, stride, pad):
    k = w.shape[2]
    w_flip = jnp.flip(w, (2, 3)).transpose(1, 0, 2, 3)        # (Cout, Cin, k, k)
    return jax.lax.conv_general_dilated(
        x, w_flip, window_strides=(1, 1),
        padding=[(k - 1 - pad, k - 1 - pad)] * 2,
        lhs_dilation=(stride, stride),
        dimension_numbers=("NCHW", "OIHW", "NCHW"))


def dcgan_reference(x, w1, w2, w3):
    h = jnp.maximum(_convt_ref(x, w1, 1, 0), 0.0)
    h = jnp.maximum(_convt_ref(h, w2, 2, 1), 0.0)
    return jnp.tanh(_convt_ref(h, w3, 2, 1))


# --------------------------------------------------------------------------- #
if __name__ == "__main__":
    isize, nz, nc, ngf = 16, 8, 3, 8
    batch = 2

    key = jax.random.PRNGKey(0)
    kp, kx = jax.random.split(key)
    raw_w, packed = build_params(kp, isize, nz, nc, ngf, batch)
    x = jax.random.normal(kx, (batch, nz, 1, 1), jnp.float32)   # latent, NCHW

    fwd = jax.jit(functools.partial(dcgan_g_nobn_forward, packed=packed))
    out = jax.block_until_ready(fwd(x))
    assert out.shape == (batch, nc, isize, isize), out.shape

    ref = jax.block_until_ready(dcgan_reference(x, *raw_w))
    np.testing.assert_allclose(np.asarray(out), np.asarray(ref),
                               rtol=5e-2, atol=1e-4)
    print("KERNEL_OK")
</pallas_src>

<mosaic_0001>
module attributes {stable_mosaic.version = 11 : i64} {
  func.func @_dcgan_fused_kernel(%arg0: memref<8x2xf32, #tpu.memory_space<vmem>>, %arg1: memref<8x16x16xf32, #tpu.memory_space<vmem>>, %arg2: memref<32x288xf32, #tpu.memory_space<vmem>>, %arg3: memref<32x144xf32, #tpu.memory_space<vmem>>, %arg4: memref<128x1152xf32, #tpu.memory_space<vmem>>, %arg5: memref<12x72xf32, #tpu.memory_space<vmem>>, %arg6: memref<12x128xf32, #tpu.memory_space<vmem>>) attributes {dimension_semantics = [], scalar_prefetch = 0 : i64, scratch_operands = 0 : i64, tpu.core_type = #tpu.core_type<tc>} {
    %c0 = arith.constant 0 : index
    %c0_0 = arith.constant 0 : index
    %0 = vector.load %arg0[%c0, %c0_0] : memref<8x2xf32, #tpu.memory_space<vmem>>, vector<8x2xf32>
    %cst = arith.constant 0.000000e+00 : f32
    %1 = vector.broadcast %cst : f32 to vector<16x16xf32>
    %c0_1 = arith.constant 0 : index
    %c0_2 = arith.constant 0 : index
    %c0_3 = arith.constant 0 : index
    %2 = vector.load %arg1[%c0_1, %c0_2, %c0_3] : memref<8x16x16xf32, #tpu.memory_space<vmem>>, vector<1x16x16xf32>
    %3 = vector.shape_cast %2 : vector<1x16x16xf32> to vector<16x16xf32>
    %4 = vector.extract_strided_slice %0 {offsets = [0, 0], sizes = [1, 1], strides = [1, 1]} : vector<8x2xf32> to vector<1x1xf32>
    %5 = vector.broadcast %4 : vector<1x1xf32> to vector<16x16xf32>
    %6 = arith.mulf %3, %5 : vector<16x16xf32>
    %7 = arith.addf %1, %6 : vector<16x16xf32>
    %c1 = arith.constant 1 : index
    %c0_4 = arith.constant 0 : index
    %c0_5 = arith.constant 0 : index
    %8 = vector.load %arg1[%c1, %c0_4, %c0_5] : memref<8x16x16xf32, #tpu.memory_space<vmem>>, vector<1x16x16xf32>
    %9 = vector.shape_cast %8 : vector<1x16x16xf32> to vector<16x16xf32>
    %10 = vector.extract_strided_slice %0 {offsets = [1, 0], sizes = [1, 1], strides = [1, 1]} : vector<8x2xf32> to vector<1x1xf32>
    %11 = vector.broadcast %10 : vector<1x1xf32> to vector<16x16xf32>
    %12 = arith.mulf %9, %11 : vector<16x16xf32>
    %13 = arith.addf %7, %12 : vector<16x16xf32>
    %c2 = arith.constant 2 : index
    %c0_6 = arith.constant 0 : index
    %c0_7 = arith.constant 0 : index
    %14 = vector.load %arg1[%c2, %c0_6, %c0_7] : memref<8x16x16xf32, #tpu.memory_space<vmem>>, vector<1x16x16xf32>
    %15 = vector.shape_cast %14 : vector<1x16x16xf32> to vector<16x16xf32>
    %16 = vector.extract_strided_slice %0 {offsets = [2, 0], sizes = [1, 1], strides = [1, 1]} : vector<8x2xf32> to vector<1x1xf32>
    %17 = vector.broadcast %16 : vector<1x1xf32> to vector<16x16xf32>
    %18 = arith.mulf %15, %17 : vector<16x16xf32>
    %19 = arith.addf %13, %18 : vector<16x16xf32>
    %c3 = arith.constant 3 : index
    %c0_8 = arith.constant 0 : index
    %c0_9 = arith.constant 0 : index
    %20 = vector.load %arg1[%c3, %c0_8, %c0_9] : memref<8x16x16xf32, #tpu.memory_space<vmem>>, vector<1x16x16xf32>
    %21 = vector.shape_cast %20 : vector<1x16x16xf32> to vector<16x16xf32>
    %22 = vector.extract_strided_slice %0 {offsets = [3, 0], sizes = [1, 1], strides = [1, 1]} : vector<8x2xf32> to vector<1x1xf32>
    %23 = vector.broadcast %22 : vector<1x1xf32> to vector<16x16xf32>
    %24 = arith.mulf %21, %23 : vector<16x16xf32>
    %25 = arith.addf %19, %24 : vector<16x16xf32>
    %c4 = arith.constant 4 : index
    %c0_10 = arith.constant 0 : index
    %c0_11 = arith.constant 0 : index
    %26 = vector.load %arg1[%c4, %c0_10, %c0_11] : memref<8x16x16xf32, #tpu.memory_space<vmem>>, vector<1x16x16xf32>
    %27 = vector.shape_cast %26 : vector<1x16x16xf32> to vector<16x16xf32>
    %28 = vector.extract_strided_slice %0 {offsets = [4, 0], sizes = [1, 1], strides = [1, 1]} : vector<8x2xf32> to vector<1x1xf32>
    %29 = vector.broadcast %28 : vector<1x1xf32> to vector<16x16xf32>
    %30 = arith.mulf %27, %29 : vector<16x16xf32>
    %31 = arith.addf %25, %30 : vector<16x16xf32>
    %c5 = arith.constant 5 : index
    %c0_12 = arith.constant 0 : index
    %c0_13 = arith.constant 0 : index
    %32 = vector.load %arg1[%c5, %c0_12, %c0_13] : memref<8x16x16xf32, #tpu.memory_space<vmem>>, vector<1x16x16xf32>
    %33 = vector.shape_cast %32 : vector<1x16x16xf32> to vector<16x16xf32>
    %34 = vector.extract_strided_slice %0 {offsets = [5, 0], sizes = [1, 1], strides = [1, 1]} : vector<8x2xf32> to vector<1x1xf32>
    %35 = vector.broadcast %34 : vector<1x1xf32> to vector<16x16xf32>
    %36 = arith.mulf %33, %35 : vector<16x16xf32>
    %37 = arith.addf %31, %36 : vector<16x16xf32>
    %c6 = arith.constant 6 : index
    %c0_14 = arith.constant 0 : index
    %c0_15 = arith.constant 0 : index
    %38 = vector.load %arg1[%c6, %c0_14, %c0_15] : memref<8x16x16xf32, #tpu.memory_space<vmem>>, vector<1x16x16xf32>
    %39 = vector.shape_cast %38 : vector<1x16x16xf32> to vector<16x16xf32>
    %40 = vector.extract_strided_slice %0 {offsets = [6, 0], sizes = [1, 1], strides = [1, 1]} : vector<8x2xf32> to vector<1x1xf32>
    %41 = vector.broadcast %40 : vector<1x1xf32> to vector<16x16xf32>
    %42 = arith.mulf %39, %41 : vector<16x16xf32>
    %43 = arith.addf %37, %42 : vector<16x16xf32>
    %c7 = arith.constant 7 : index
    %c0_16 = arith.constant 0 : index
    %c0_17 = arith.constant 0 : index
    %44 = vector.load %arg1[%c7, %c0_16, %c0_17] : memref<8x16x16xf32, #tpu.memory_space<vmem>>, vector<1x16x16xf32>
    %45 = vector.shape_cast %44 : vector<1x16x16xf32> to vector<16x16xf32>
    %46 = vector.extract_strided_slice %0 {offsets = [7, 0], sizes = [1, 1], strides = [1, 1]} : vector<8x2xf32> to vector<1x1xf32>
    %47 = vector.broadcast %46 : vector<1x1xf32> to vector<16x16xf32>
    %48 = arith.mulf %45, %47 : vector<16x16xf32>
    %49 = arith.addf %43, %48 : vector<16x16xf32>
    %cst_18 = arith.constant 0.000000e+00 : f32
    %50 = vector.broadcast %cst_18 : f32 to vector<16x16xf32>
    %c0_19 = arith.constant 0 : index
    %c0_20 = arith.constant 0 : index
    %c0_21 = arith.constant 0 : index
    %51 = vector.load %arg1[%c0_19, %c0_20, %c0_21] : memref<8x16x16xf32, #tpu.memory_space<vmem>>, vector<1x16x16xf32>
    %52 = vector.shape_cast %51 : vector<1x16x16xf32> to vector<16x16xf32>
    %53 = vector.extract_strided_slice %0 {offsets = [0, 1], sizes = [1, 1], strides = [1, 1]} : vector<8x2xf32> to vector<1x1xf32>
    %54 = vector.broadcast %53 : vector<1x1xf32> to vector<16x16xf32>
    %55 = arith.mulf %52, %54 : vector<16x16xf32>
    %56 = arith.addf %50, %55 : vector<16x16xf32>
    %c1_22 = arith.constant 1 : index
    %c0_23 = arith.constant 0 : index
    %c0_24 = arith.constant 0 : index
    %57 = vector.load %arg1[%c1_22, %c0_23, %c0_24] : memref<8x16x16xf32, #tpu.memory_space<vmem>>, vector<1x16x16xf32>
    %58 = vector.shape_cast %57 : vector<1x16x16xf32> to vector<16x16xf32>
    %59 = vector.extract_strided_slice %0 {offsets = [1, 1], sizes = [1, 1], strides = [1, 1]} : vector<8x2xf32> to vector<1x1xf32>
    %60 = vector.broadcast %59 : vector<1x1xf32> to vector<16x16xf32>
    %61 = arith.mulf %58, %60 : vector<16x16xf32>
    %62 = arith.addf %56, %61 : vector<16x16xf32>
    %c2_25 = arith.constant 2 : index
    %c0_26 = arith.constant 0 : index
    %c0_27 = arith.constant 0 : index
    %63 = vector.load %arg1[%c2_25, %c0_26, %c0_27] : memref<8x16x16xf32, #tpu.memory_space<vmem>>, vector<1x16x16xf32>
    %64 = vector.shape_cast %63 : vector<1x16x16xf32> to vector<16x16xf32>
    %65 = vector.extract_strided_slice %0 {offsets = [2, 1], sizes = [1, 1], strides = [1, 1]} : vector<8x2xf32> to vector<1x1xf32>
    %66 = vector.broadcast %65 : vector<1x1xf32> to vector<16x16xf32>
    %67 = arith.mulf %64, %66 : vector<16x16xf32>
    %68 = arith.addf %62, %67 : vector<16x16xf32>
    %c3_28 = arith.constant 3 : index
    %c0_29 = arith.constant 0 : index
    %c0_30 = arith.constant 0 : index
    %69 = vector.load %arg1[%c3_28, %c0_29, %c0_30] : memref<8x16x16xf32, #tpu.memory_space<vmem>>, vector<1x16x16xf32>
    %70 = vector.shape_cast %69 : vector<1x16x16xf32> to vector<16x16xf32>
    %71 = vector.extract_strided_slice %0 {offsets = [3, 1], sizes = [1, 1], strides = [1, 1]} : vector<8x2xf32> to vector<1x1xf32>
    %72 = vector.broadcast %71 : vector<1x1xf32> to vector<16x16xf32>
    %73 = arith.mulf %70, %72 : vector<16x16xf32>
    %74 = arith.addf %68, %73 : vector<16x16xf32>
    %c4_31 = arith.constant 4 : index
    %c0_32 = arith.constant 0 : index
    %c0_33 = arith.constant 0 : index
    %75 = vector.load %arg1[%c4_31, %c0_32, %c0_33] : memref<8x16x16xf32, #tpu.memory_space<vmem>>, vector<1x16x16xf32>
    %76 = vector.shape_cast %75 : vector<1x16x16xf32> to vector<16x16xf32>
    %77 = vector.extract_strided_slice %0 {offsets = [4, 1], sizes = [1, 1], strides = [1, 1]} : vector<8x2xf32> to vector<1x1xf32>
    %78 = vector.broadcast %77 : vector<1x1xf32> to vector<16x16xf32>
    %79 = arith.mulf %76, %78 : vector<16x16xf32>
    %80 = arith.addf %74, %79 : vector<16x16xf32>
    %c5_34 = arith.constant 5 : index
    %c0_35 = arith.constant 0 : index
    %c0_36 = arith.constant 0 : index
    %81 = vector.load %arg1[%c5_34, %c0_35, %c0_36] : memref<8x16x16xf32, #tpu.memory_space<vmem>>, vector<1x16x16xf32>
    %82 = vector.shape_cast %81 : vector<1x16x16xf32> to vector<16x16xf32>
    %83 = vector.extract_strided_slice %0 {offsets = [5, 1], sizes = [1, 1], strides = [1, 1]} : vector<8x2xf32> to vector<1x1xf32>
    %84 = vector.broadcast %83 : vector<1x1xf32> to vector<16x16xf32>
    %85 = arith.mulf %82, %84 : vector<16x16xf32>
    %86 = arith.addf %80, %85 : vector<16x16xf32>
    %c6_37 = arith.constant 6 : index
    %c0_38 = arith.constant 0 : index
    %c0_39 = arith.constant 0 : index
    %87 = vector.load %arg1[%c6_37, %c0_38, %c0_39] : memref<8x16x16xf32, #tpu.memory_space<vmem>>, vector<1x16x16xf32>
    %88 = vector.shape_cast %87 : vector<1x16x16xf32> to vector<16x16xf32>
    %89 = vector.extract_strided_slice %0 {offsets = [6, 1], sizes = [1, 1], strides = [1, 1]} : vector<8x2xf32> to vector<1x1xf32>
    %90 = vector.broadcast %89 : vector<1x1xf32> to vector<16x16xf32>
    %91 = arith.mulf %88, %90 : vector<16x16xf32>
    %92 = arith.addf %86, %91 : vector<16x16xf32>
    %c7_40 = arith.constant 7 : index
    %c0_41 = arith.constant 0 : index
    %c0_42 = arith.constant 0 : index
    %93 = vector.load %arg1[%c7_40, %c0_41, %c0_42] : memref<8x16x16xf32, #tpu.memory_space<vmem>>, vector<1x16x16xf32>
    %94 = vector.shape_cast %93 : vector<1x16x16xf32> to vector<16x16xf32>
    %95 = vector.extract_strided_slice %0 {offsets = [7, 1], sizes = [1, 1], strides = [1, 1]} : vector<8x2xf32> to vector<1x1xf32>
    %96 = vector.broadcast %95 : vector<1x1xf32> to vector<16x16xf32>
    %97 = arith.mulf %94, %96 : vector<16x16xf32>
    %98 = arith.addf %92, %97 : vector<16x16xf32>
    %99 = tpu.concatenate %49, %98 in 1 : vector<16x16xf32>, vector<16x16xf32> -> vector<16x32xf32>
    %cst_43 = arith.constant 0.000000e+00 : f32
    %100 = vector.broadcast %cst_43 : f32 to vector<16x32xf32>
    %101 = arith.maximumf %99, %100 : vector<16x32xf32>
    %c0_44 = arith.constant 0 : index
    %c0_45 = arith.constant 0 : index
    %102 = vector.load %arg2[%c0_44, %c0_45] : memref<32x288xf32, #tpu.memory_space<vmem>>, vector<32x288xf32>
    %cst_46 = arith.constant dense<0.000000e+00> : vector<16x288xf32>
    %103 = tpu.matmul %101, %102, %cst_46 {dimension_numbers = #tpu.dot_dimension_numbers<[1], [0], [0], [1], [0, 0, 1, 1], [], []>} : vector<16x32xf32>, vector<32x288xf32>, vector<16x288xf32> -> vector<16x288xf32>
    %104 = vector.extract_strided_slice %103 {offsets = [0, 0], sizes = [16, 32], strides = [1, 1]} : vector<16x288xf32> to vector<16x32xf32>
    %105 = vector.extract_strided_slice %103 {offsets = [0, 32], sizes = [16, 32], strides = [1, 1]} : vector<16x288xf32> to vector<16x32xf32>
    %106 = vector.extract_strided_slice %103 {offsets = [0, 64], sizes = [16, 32], strides = [1, 1]} : vector<16x288xf32> to vector<16x32xf32>
    %107 = vector.extract_strided_slice %103 {offsets = [0, 96], sizes = [16, 32], strides = [1, 1]} : vector<16x288xf32> to vector<16x32xf32>
    %108 = vector.extract_strided_slice %103 {offsets = [0, 128], sizes = [16, 32], strides = [1, 1]} : vector<16x288xf32> to vector<16x32xf32>
    %109 = vector.extract_strided_slice %103 {offsets = [0, 160], sizes = [16, 32], strides = [1, 1]} : vector<16x288xf32> to vector<16x32xf32>
    %110 = vector.extract_strided_slice %103 {offsets = [0, 192], sizes = [16, 32], strides = [1, 1]} : vector<16x288xf32> to vector<16x32xf32>
    %111 = vector.extract_strided_slice %103 {offsets = [0, 224], sizes = [16, 32], strides = [1, 1]} : vector<16x288xf32> to vector<16x32xf32>
    %112 = vector.extract_strided_slice %103 {offsets = [0, 256], sizes = [16, 32], strides = [1, 1]} : vector<16x288xf32> to vector<16x32xf32>
    %113 = tpu.concatenate %104, %105, %106, %107, %108, %109, %110, %111, %112 in 0 : vector<16x32xf32>, vector<16x32xf32>, vector<16x32xf32>, vector<16x32xf32>, vector<16x32xf32>, vector<16x32xf32>, vector<16x32xf32>, vector<16x32xf32>, vector<16x32xf32> -> vector<144x32xf32>
    %c0_47 = arith.constant 0 : index
    %c0_48 = arith.constant 0 : index
    %114 = vector.load %arg3[%c0_47, %c0_48] : memref<32x144xf32, #tpu.memory_space<vmem>>, vector<32x144xf32>
    %cst_49 = arith.constant dense<0.000000e+00> : vector<32x32xf32>
    %115 = tpu.matmul %114, %113, %cst_49 {dimension_numbers = #tpu.dot_dimension_numbers<[1], [0], [0], [1], [0, 0, 1, 1], [], []>} : vector<32x144xf32>, vector<144x32xf32>, vector<32x32xf32> -> vector<32x32xf32>
    %cst_50 = arith.constant 0.000000e+00 : f32
    %116 = vector.broadcast %cst_50 : f32 to vector<32x32xf32>
    %117 = arith.maximumf %115, %116 : vector<32x32xf32>
    %118 = vector.extract_strided_slice %117 {offsets = [0, 0], sizes = [8, 32], strides = [1, 1]} : vector<32x32xf32> to vector<8x32xf32>
    %119 = vector.extract_strided_slice %117 {offsets = [8, 0], sizes = [8, 32], strides = [1, 1]} : vector<32x32xf32> to vector<8x32xf32>
    %120 = vector.extract_strided_slice %117 {offsets = [16, 0], sizes = [8, 32], strides = [1, 1]} : vector<32x32xf32> to vector<8x32xf32>
    %121 = vector.extract_strided_slice %117 {offsets = [24, 0], sizes = [8, 32], strides = [1, 1]} : vector<32x32xf32> to vector<8x32xf32>
    %122 = tpu.concatenate %118, %119, %120, %121 in 1 : vector<8x32xf32>, vector<8x32xf32>, vector<8x32xf32>, vector<8x32xf32> -> vector<8x128xf32>
    %c0_51 = arith.constant 0 : index
    %c0_52 = arith.constant 0 : index
    %123 = vector.load %arg4[%c0_51, %c0_52] : memref<128x1152xf32, #tpu.memory_space<vmem>>, vector<128x1152xf32>
    %cst_53 = arith.constant dense<0.000000e+00> : vector<8x1152xf32>
    %124 = tpu.matmul %122, %123, %cst_53 {dimension_numbers = #tpu.dot_dimension_numbers<[1], [0], [0], [1], [0, 0, 1, 1], [], []>} : vector<8x128xf32>, vector<128x1152xf32>, vector<8x1152xf32> -> vector<8x1152xf32>
    %125 = vector.extract_strided_slice %124 {offsets = [0, 0], sizes = [8, 128], strides = [1, 1]} : vector<8x1152xf32> to vector<8x128xf32>
    %126 = vector.extract_strided_slice %124 {offsets = [0, 128], sizes = [8, 128], strides = [1, 1]} : vector<8x1152xf32> to vector<8x128xf32>
    %127 = vector.extract_strided_slice %124 {offsets = [0, 256], sizes = [8, 128], strides = [1, 1]} : vector<8x1152xf32> to vector<8x128xf32>
    %128 = vector.extract_strided_slice %124 {offsets = [0, 384], sizes = [8, 128], strides = [1, 1]} : vector<8x1152xf32> to vector<8x128xf32>
    %129 = vector.extract_strided_slice %124 {offsets = [0, 512], sizes = [8, 128], strides = [1, 1]} : vector<8x1152xf32> to vector<8x128xf32>
    %130 = vector.extract_strided_slice %124 {offsets = [0, 640], sizes = [8, 128], strides = [1, 1]} : vector<8x1152xf32> to vector<8x128xf32>
    %131 = vector.extract_strided_slice %124 {offsets = [0, 768], sizes = [8, 128], strides = [1, 1]} : vector<8x1152xf32> to vector<8x128xf32>
    %132 = vector.extract_strided_slice %124 {offsets = [0, 896], sizes = [8, 128], strides = [1, 1]} : vector<8x1152xf32> to vector<8x128xf32>
    %133 = vector.extract_strided_slice %124 {offsets = [0, 1024], sizes = [8, 128], strides = [1, 1]} : vector<8x1152xf32> to vector<8x128xf32>
    %134 = tpu.concatenate %125, %126, %127, %128, %129, %130, %131, %132, %133 in 0 : vector<8x128xf32>, vector<8x128xf32>, vector<8x128xf32>, vector<8x128xf32>, vector<8x128xf32>, vector<8x128xf32>, vector<8x128xf32>, vector<8x128xf32>, vector<8x128xf32> -> vector<72x128xf32>
    %c0_54 = arith.constant 0 : index
    %c0_55 = arith.constant 0 : index
    %135 = vector.load %arg5[%c0_54, %c0_55] : memref<12x72xf32, #tpu.memory_space<vmem>>, vector<12x72xf32>
    %cst_56 = arith.constant dense<0.000000e+00> : vector<12x128xf32>
    %136 = tpu.matmul %135, %134, %cst_56 {dimension_numbers = #tpu.dot_dimension_numbers<[1], [0], [0], [1], [0, 0, 1, 1], [], []>} : vector<12x72xf32>, vector<72x128xf32>, vector<12x128xf32> -> vector<12x128xf32>
    %137 = math.tanh %136 : vector<12x128xf32>
    %c0_57 = arith.constant 0 : index
    %c0_58 = arith.constant 0 : index
    %138 = vector.load %arg6[%c0_57, %c0_58] : memref<12x128xf32, #tpu.memory_space<vmem>>, vector<12x128xf32>
    tpu.vector_store %arg6[%c0_57, %c0_58], %137 {strides = array<i32>} : memref<12x128xf32, #tpu.memory_space<vmem>>, vector<12x128xf32>,
    return
  }
}

</mosaic_0001>

<bundles_post_ra>
// kernel: dcgan_g_nobn_forward.1
= control target key start
LH: loop header
LB: loop body
LE: loop exit
PB: predicated region body
PF: predicated region fallthrough
CT: control target
= control target key end

     0   :  { %11 = vsyncpa [#allocation3], 0  ;;  %s1662_s0 = inlined_call_operand.vmem [shape: f32[8,2], index: 0, kind: input, shape index: {}]   ;;  %s1663_s1 = inlined_call_operand.hbm [shape: f32[8,16,16], index: 1, kind: input, shape index: {}]   ;;  %s1664_s2 = inlined_call_operand.hbm [shape: f32[32,288], index: 2, kind: input, shape index: {}]   ;;  %s1665_s3 = inlined_call_operand.hbm [shape: f32[32,144], index: 3, kind: input, shape index: {}]   ;;  %s1666_s4 = inlined_call_operand.hbm [shape: f32[128,1152], index: 4, kind: input, shape index: {}]   ;;  %s1667_s5 = inlined_call_operand.vmem [shape: f32[12,72], index: 5, kind: input, shape index: {}]   ;;  %s1668_s6 = inlined_call_operand.vmem [shape: f32[12,128], index: 6, kind: output, shape index: {}]  }
   0x1   :  { %12 = vsyncpa [#allocation5], 0 }
   0x2   :  { %13 = vsyncpa [#allocation8], 0  ;;  %s1432_s21 = smov [#allocation4]  }
   0x3   :  { %s33_s22 = sshll.u32 %s1432_s21, 4  ;;  %s34_s22 = int_to_ptr.vmem [resolvable:$true] %s33_s22 }
   0x4   :  { %s1354_s23 = scalar_lea.vmem %s34_s22, 1536  ;;  %p1359_p1 = scmp.lt.s32.totalorder %s34_s22, %s34_s22 }
   0x5   :  { %p1355_p0 = scmp.ne.s32.totalorder %s34_s22, %s1354_s23  ;;  %p1360_p2 = scmp.lt.s32.totalorder %s1354_s23, %s1354_s23 }
   0x7   :  { %p1361_p3 = por %p1360_p2, %p1359_p1 }
   0x9   :  { %p1362_p4 = pnand %p1361_p3, %p1355_p0 }
   0xb   :  { %1365 = shalt.err (!%p1362_p4)
}
   0xc   :  { %s1433_s24 = smov 384   ;;  %s1434_s25 = smov 24  }
   0xd   :  { %39 = dma.hbm_to_vmem [thread:$0]  %s1664_s2, 1536, %s34_s22, [#allocation5], %s1433_s24, %s1433_s24, %s1434_s25  }
   0xe   :  { %s1435_s28 = smov [#allocation2]  }
   0xf   :  { %s21_s29 = sshll.u32 %s1435_s28, 4  ;;  %s22_s29 = int_to_ptr.vmem [resolvable:$true] %s21_s29 }
  0x10   :  { %s1374_s30 = scalar_lea.vmem %s22_s29, 2048  ;;  %p1379_p6 = scmp.lt.s32.totalorder %s22_s29, %s22_s29 }
  0x11   :  { %p1375_p5 = scmp.ne.s32.totalorder %s22_s29, %s1374_s30  ;;  %p1380_p7 = scmp.lt.s32.totalorder %s1374_s30, %s1374_s30 }
  0x13   :  { %p1381_p8 = por %p1380_p7, %p1379_p6 }
  0x15   :  { %p1382_p9 = pnand %p1381_p8, %p1375_p5 }
  0x17   :  { %1385 = shalt.err (!%p1382_p9)
}
  0x18   :  { %s1436_s7 = smov 128   ;;  %s1437_s8 = smov 8  }
  0x19   :  { %27 = dma.hbm_to_vmem [thread:$0]  %s1663_s1, 2048, %s22_s29, [#allocation3], %s1436_s7, %s1436_s7, %s1437_s8  }
  0x1a   :  { %s1438_s11 = smov [#allocation6]  }
  0x1b   :  { %s45_s12 = sshll.u32 %s1438_s11, 4  ;;  %s46_s12 = int_to_ptr.vmem [resolvable:$true] %s45_s12 }
  0x1c   :  { %s1394_s2 = scalar_lea.vmem %s46_s12, 1024  ;;  %p1399_p11 = scmp.lt.s32.totalorder %s46_s12, %s46_s12 }
  0x1d   :  { %p1395_p10 = scmp.ne.s32.totalorder %s46_s12, %s1394_s2  ;;  %p1400_p12 = scmp.lt.s32.totalorder %s1394_s2, %s1394_s2 }
  0x1f   :  { %p1401_p13 = por %p1400_p12, %p1399_p11 }
  0x21   :  { %p1402_p0 = pnand %p1401_p13, %p1395_p10 }
  0x23   :  { %1405 = shalt.err (!%p1402_p0)
}
  0x24   :  { %s1439_s13 = smov 256   ;;  %s1440_s14 = smov 16  }
  0x25   :  { %51 = dma.hbm_to_vmem [thread:$0]  %s1665_s3, 1024, %s46_s12, [#allocation5], %s1439_s13, %s1439_s13, %s1440_s14  }
  0x26   :  { %s1441_s17 = smov [#allocation7]  }
  0x27   :  { %s57_s18 = sshll.u32 %s1441_s17, 4  ;;  %s58_s18 = int_to_ptr.vmem [resolvable:$true] %s57_s18 }
  0x28   :  { %s1414_s1 = scalar_lea.vmem %s58_s18, 18432  ;;  %p1419_p2 = scmp.lt.s32.totalorder %s58_s18, %s58_s18 }
  0x29   :  { %p1415_p1 = scmp.ne.s32.totalorder %s58_s18, %s1414_s1  ;;  %p1420_p3 = scmp.lt.s32.totalorder %s1414_s1, %s1414_s1 }
  0x2b   :  { %p1421_p4 = por %p1420_p3, %p1419_p2 }
  0x2d   :  { %p1422_p5 = pnand %p1421_p4, %p1415_p1 }
  0x2f   :  { %1425 = shalt.err (!%p1422_p5)
}
  0x30   :  { %s1442_s19 = smov 1152   ;;  %s1443_s20 = smov 72  }
  0x31   :  { %63 = dma.hbm_to_vmem [thread:$0]  %s1666_s4, 18432, %s58_s18, [#allocation8], %s1442_s19, %s1442_s19, %s1443_s20  }
  0x32   :  { %1426 = dma.done.wait [#allocation3], 2048  }
  0x33   :  { %1427 = vsyncadd [#allocation3], 4294965248 }
  0x34   :  { %1428 = dma.done.wait [#allocation5], 2560  }
  0x35   :  { %1429 = vsyncadd [#allocation5], 4294964736 }
  0x36   :  { %1430 = dma.done.wait [#allocation8], 18432  }
  0x37   :  { %1431 = vsyncadd [#allocation8], 4294948864  ;;  %v78_v0 = vld [vmem:[%s1662_s0] sm:$0xff]  ;;  %s1444_s24 = smov 127   ;;  %v1503_v9 = vld [vmem:[#allocation2 + $0x8] sm:$0xff]  ;;  %vm246_vm0 = vcmask 130048  }
  0x38   :  { %166 = vrot.lane.b32.xlu0 %v78_v0, %s1444_s24  ;;  %v103_v1 = vrot.slane %v78_v0, 2  ;;  %v92_v2 = vrot.slane %v78_v0, 1  ;;  %1292 = vpush %v78_v0  ;;  %v114_v3 = vrot.slane %v78_v0, 3  ;;  %v125_v4 = vrot.slane %v78_v0, 4  ;;  %v1501_v8 = vld [vmem:[#allocation2] sm:$0xff]  ;;  %v1505_v11 = vld [vmem:[#allocation2 + $0x10] sm:$0xff] }
  0x39   :  { %v136_v5 = vrot.slane %v78_v0, 5  ;;  %v147_v6 = vrot.slane %v78_v0, 6  ;;  %v158_v7 = vrot.slane %v78_v0, 7  ;;  %v1507_v12 = vld [vmem:[#allocation2 + $0x18] sm:$0xff]  ;;  %v1511_v15 = vld [vmem:[#allocation2 + $0x20] sm:$0xff]  ;;  %v1513_v16 = vld [vmem:[#allocation2 + $0x28] sm:$0xff] }
  0x3a   :  { %184 = vrot.lane.b32.xlu1 %v103_v1, %s1444_s24  ;;  %1294 = vpush %v92_v2  ;;  %v1515_v18 = vld [vmem:[#allocation2 + $0x30] sm:$0xff]  ;;  %v1517_v19 = vld [vmem:[#allocation2 + $0x38] sm:$0xff]  ;;  %v1523_v26 = vld [vmem:[#allocation2 + $0x40] sm:$0xff]  ;;  %vm263_vm1 = vcmask 261120   ;;  %s1447_s15 = smov 64   ;;  %s1448_s16 = smov 96  }
  0x3b   :  { %1296 = vpush %v103_v1  ;;  %v1525_v27 = vld [vmem:[#allocation2 + $0x48] sm:$0xff]  ;;  %v1529_v33 = vld [vmem:[#allocation2 + $0x50] sm:$0xff]  ;;  %v1531_v34 = vld [vmem:[#allocation2 + $0x58] sm:$0xff]  ;;  %vm584_vm2 = vcmask 523264   ;;  %vm586_vm3 = vcmask 785408   ;;  %vm1449_vm4 = vmmov 0  }
  0x3c   :  { %175 = vrot.lane.b32.xlu0 %v92_v2, %s1444_s24  ;;  %1298 = vpush %v114_v3  ;;  %v1535_v40 = vld [vmem:[#allocation2 + $0x60] sm:$0xff]  ;;  %v1537_v41 = vld [vmem:[#allocation2 + $0x68] sm:$0xff]  ;;  %v261_v43 = vld [vmem:[#allocation4 + $0x50] sm:$0xff]  ;;  %vm1088_vm5 = vcmask 588800  }
  0x3d   :  { %1300 = vpush %v125_v4  ;;  %v260_v44 = vld [vmem:[#allocation4 + $0x48] sm:$0xff]  ;;  %v258_v45 = vld [vmem:[#allocation4 + $0x38] sm:$0xff]  ;;  %294 = vmatprep.subr.mxu0 %v261_v43  ;;  %v257_v50 = vld [vmem:[#allocation4 + $0x30] sm:$0xff] }
  0x3e   :  { %193 = vrot.lane.b32.xlu1 %v114_v3, %s1444_s24  ;;  %1302 = vpush %v136_v5  ;;  %295 = vmatpush1.msra.mxu0 %v260_v44  ;;  %v255_v51 = vld [vmem:[#allocation4 + $0x20] sm:$0xff] }
  0x3f   :  { %1304 = vpush %v147_v6  ;;  %296 = vmatprep.subr.mxu0 %v258_v45 }
  0x40   :  { %202 = vrot.lane.b32.xlu0 %v125_v4, %s1444_s24  ;;  %1306 = vpush %v158_v7  ;;  %297 = vmatpush1.msra.mxu0 %v257_v50 }
  0x41   :  { %298 = vmatprep.subr.mxu0 %v255_v51 }
  0x42   :  { %211 = vrot.lane.b32.xlu1 %v136_v5, %s1444_s24 }
  0x44   :  { %220 = vrot.lane.b32.xlu0 %v147_v6, %s1444_s24 }
  0x46   :  { %229 = vrot.lane.b32.xlu1 %v158_v7, %s1444_s24 }
  0x69   :  { %s1293_s0 = spop %1292 }
  0x6a   :  { %v83_v10 = vstv %s1293_s0 }
  0x6b   :  { %v85_v13 = vmul.f32 %v83_v10, %v1501_v8  ;;  %v86_v14 = vmul.f32 %v83_v10, %v1503_v9  ;;  %s1295_s4 = spop %1294 }
  0x6c   :  { %v94_v17 = vstv %s1295_s4  ;;  %s1297_s25 = spop %1296 }
  0x6d   :  { %v96_v20 = vmul.f32 %v94_v17, %v1505_v11  ;;  %v97_v21 = vmul.f32 %v94_v17, %v1507_v12  ;;  %v105_v22 = vstv %s1297_s25  ;;  %s1299_s26 = spop %1298 }
  0x6e   :  { %v107_v23 = vmul.f32 %v105_v22, %v1511_v15  ;;  %v108_v24 = vmul.f32 %v105_v22, %v1513_v16  ;;  %v116_v25 = vstv %s1299_s26  ;;  %s1301_s27 = spop %1300 }
  0x6f   :  { %v98_v28 = vadd.f32 %v96_v20, %v85_v13  ;;  %v99_v29 = vadd.f32 %v97_v21, %v86_v14  ;;  %v118_v30 = vmul.f32 %v116_v25, %v1515_v18  ;;  %v119_v31 = vmul.f32 %v116_v25, %v1517_v19  ;;  %s1303_s28 = spop %1302 }
  0x70   :  { %v127_v32 = vstv %s1301_s27  ;;  %v138_v35 = vstv %s1303_s28  ;;  %s1305_s29 = spop %1304 }
  0x71   :  { %v109_v36 = vadd.f32 %v107_v23, %v98_v28  ;;  %v110_v37 = vadd.f32 %v108_v24, %v99_v29  ;;  %v129_v38 = vmul.f32 %v127_v32, %v1523_v26  ;;  %v130_v39 = vmul.f32 %v127_v32, %v1525_v27  ;;  %s1547_s30 = spop %1306 }
  0x72   :  { %v149_v42 = vstv %s1305_s29  ;;  %v140_v48 = vmul.f32 %v138_v35, %v1529_v33  ;;  %v141_v49 = vmul.f32 %v138_v35, %v1531_v34  ;;  %v262_v35 = vld [vmem:[#allocation4 + $0x58] sm:$0xff] }
  0x73   :  { %v120_v46 = vadd.f32 %v118_v30, %v109_v36  ;;  %v121_v47 = vadd.f32 %v119_v31, %v110_v37  ;;  %v151_v54 = vmul.f32 %v149_v42, %v1535_v40  ;;  %v152_v55 = vmul.f32 %v149_v42, %v1537_v41 }
  0x74   :  { %v1445_v37 = vmov 0.0  }
  0x75   :  { %v131_v52 = vadd.f32 %v129_v38, %v120_v46  ;;  %v132_v53 = vadd.f32 %v130_v39, %v121_v47  ;;  %334 = vmatprep.mubr.f32.mxu0 %v1445_v37  ;;  %796 = vmatprep.mubr.f32.mxu1 %v1445_v37 }
  0x77   :  { %v142_v56 = vadd.f32 %v140_v48, %v131_v52  ;;  %v143_v57 = vadd.f32 %v141_v49, %v132_v53 }
  0x79   :  { %v1543_v58 = vadd.f32 %v151_v54, %v142_v56  ;;  %v1545_v59 = vadd.f32 %v152_v55, %v143_v57 }
  0xaa   :  { %v167_v60 = vpop.permute.xlu0 %166 }
  0xab   :  { %1308 = vpush %v167_v60 }
  0xac   :  { %v185_v61 = vpop.permute.xlu1 %184 }
  0xae   :  { %v176_v62 = vpop.permute.xlu0 %175 }
  0xaf   :  { %1310 = vpush %v176_v62  ;;  %v256_v62 = vld [vmem:[#allocation4 + $0x28] sm:$0xff] }
  0xb0   :  { %1312 = vpush %v185_v61  ;;  %v194_v63 = vpop.permute.xlu1 %193  ;;  %v259_v61 = vld [vmem:[#allocation4 + $0x40] sm:$0xff] }
  0xb1   :  { %1314 = vpush %v194_v63 }
  0xb2   :  { %v203_v0 = vpop.permute.xlu0 %202 }
  0xb3   :  { %1316 = vpush %v203_v0 }
  0xb4   :  { %v212_v1 = vpop.permute.xlu1 %211 }
  0xb5   :  { %1318 = vpush %v212_v1 }
  0xb6   :  { %v221_v2 = vpop.permute.xlu0 %220 }
  0xb7   :  { %1320 = vpush %v221_v2 }
  0xb8   :  { %v230_v3 = vpop.permute.xlu1 %229 }
  0xb9   :  { %1322 = vpush %v230_v3  ;;  %v463_v3 = vld [vmem:[#allocation6 + $0x8] sm:$0xff] }
  0xdc   :  { %s1309_s7 = spop %1308 }
  0xdd   :  { %v169_v4 = vstv %s1309_s7 }
  0xde   :  { %v171_v5 = vmul.f32 %v169_v4, %v1501_v8  ;;  %v172_v7 = vmul.f32 %v169_v4, %v1503_v9  ;;  %v254_v9 = vld [vmem:[#allocation4 + $0x18] sm:$0xff] }
  0xdf   :  { %299 = vmatpush1.msra.mxu0 %v254_v9  ;;  %v465_v9 = vld [vmem:[#allocation6 + $0x18] sm:$0xff] }
  0xe0   :  { %s1311_s8 = spop %1310 }
  0xe1   :  { %v178_v6 = vstv %s1311_s8  ;;  %s1313_s9 = spop %1312 }
  0xe2   :  { %v180_v10 = vmul.f32 %v178_v6, %v1505_v11  ;;  %v181_v13 = vmul.f32 %v178_v6, %v1507_v12  ;;  %v187_v14 = vstv %s1313_s9  ;;  %s1315_s10 = spop %1314 }
  0xe3   :  { %v189_v17 = vmul.f32 %v187_v14, %v1511_v15  ;;  %v190_v20 = vmul.f32 %v187_v14, %v1513_v16  ;;  %v196_v21 = vstv %s1315_s10  ;;  %v252_v15 = vld [vmem:[#allocation4 + $0x8] sm:$0xff]  ;;  %v251_v16 = vld [vmem:[#allocation4] sm:$0xff] }
  0xe4   :  { %v182_v22 = vadd.f32 %v180_v10, %v171_v5  ;;  %v183_v23 = vadd.f32 %v181_v13, %v172_v7  ;;  %v198_v24 = vmul.f32 %v196_v21, %v1515_v18  ;;  %v199_v8 = vmul.f32 %v196_v21, %v1517_v19  ;;  %s1317_s11 = spop %1316  ;;  %300 = vmatprep.subr.mxu0 %v252_v15  ;;  %v468_v15 = vld [vmem:[#allocation6 + $0x30] sm:$0xff] }
  0xe5   :  { %v205_v25 = vstv %s1317_s11  ;;  %301 = vmatpush1.msra.mxu0 %v251_v16  ;;  %v724_v16 = vld [vmem:[#allocation7 + $0x440] sm:$0xff] }
  0xe6   :  { %v191_v28 = vadd.f32 %v189_v17, %v182_v22  ;;  %v192_v11 = vadd.f32 %v190_v20, %v183_v23  ;;  %v207_v12 = vmul.f32 %v205_v25, %v1523_v26  ;;  %v208_v29 = vmul.f32 %v205_v25, %v1525_v27  ;;  %s1319_s12 = spop %1318  ;;  %1225 = vmatprep.subr.mxu0 %v262_v35 }
  0xe7   :  { %v214_v30 = vstv %s1319_s12  ;;  %732 = vmatprep.subr.mxu1 %v724_v16  ;;  %v588_v16 = vld [vmem:[#allocation7] sm:$0xff] }
  0xe8   :  { %v200_v31 = vadd.f32 %v198_v24, %v191_v28  ;;  %v201_v32 = vadd.f32 %v199_v8, %v192_v11  ;;  %v216_v18 = vmul.f32 %v214_v30, %v1529_v33  ;;  %v217_v19 = vmul.f32 %v214_v30, %v1531_v34  ;;  %s1321_s2 = spop %1320  ;;  %v156_v33 = vld [vmem:[#allocation2 + $0x70] sm:$0xff]  ;;  %v157_v34 = vld [vmem:[#allocation2 + $0x78] sm:$0xff]  ;;  %v462_v8 = vld [vmem:[#allocation6] sm:$0xff] }
  0xe9   :  { %v223_v36 = vstv %s1321_s2  ;;  %v464_v28 = vld [vmem:[#allocation6 + $0x10] sm:$0xff]  ;;  %v467_v11 = vld [vmem:[#allocation6 + $0x28] sm:$0xff]  ;;  %v728_v30 = vld [vmem:[#allocation7 + $0x460] sm:$0xff] }
  0xea   :  { %v209_v26 = vadd.f32 %v207_v12, %v200_v31  ;;  %v210_v27 = vadd.f32 %v208_v29, %v201_v32  ;;  %v225_v38 = vmul.f32 %v223_v36, %v1535_v40  ;;  %v226_v39 = vmul.f32 %v223_v36, %v1537_v41  ;;  %s1323_s13 = spop %1322  ;;  %v466_v12 = vld [vmem:[#allocation6 + $0x20] sm:$0xff]  ;;  %v469_v29 = vld [vmem:[#allocation6 + $0x38] sm:$0xff]  ;;  %v718_v36 = vld [vmem:[#allocation7 + $0x410] sm:$0xff] }
  0xeb   :  { %v232_v42 = vstv %s1323_s13  ;;  %v160_v40 = vstv %s1547_s30  ;;  %v723_v31 = vld [vmem:[#allocation7 + $0x438] sm:$0xff] }
  0xec   :  { %v218_v43 = vadd.f32 %v216_v18, %v209_v26  ;;  %v219_v44 = vadd.f32 %v217_v19, %v210_v27  ;;  %v234_v45 = vmul.f32 %v232_v42, %v156_v33  ;;  %v235_v46 = vmul.f32 %v232_v42, %v157_v34  ;;  %v727_v32 = vld [vmem:[#allocation7 + $0x458] sm:$0xff]  ;;  %733 = vmatpush1.msra.mxu1 %v723_v31  ;;  %v706_v26 = vld [vmem:[#allocation7 + $0x3b0] sm:$0xff]  ;;  %v696_v42 = vld [vmem:[#allocation7 + $0x360] sm:$0xff] }
  0xed   :  { %v162_v41 = vmul.f32 %v160_v40, %v156_v33  ;;  %v163_v51 = vmul.f32 %v160_v40, %v157_v34  ;;  %v715_v18 = vld [vmem:[#allocation7 + $0x3f8] sm:$0xff]  ;;  %v710_v27 = vld [vmem:[#allocation7 + $0x3d0] sm:$0xff]  ;;  %v697_v33 = vld [vmem:[#allocation7 + $0x368] sm:$0xff] }
  0xee   :  { %v228_v47 = vadd.f32 %v226_v39, %v219_v44  ;;  %v227_v48 = vadd.f32 %v225_v38, %v218_v43  ;;  %v719_v19 = vld [vmem:[#allocation7 + $0x418] sm:$0xff]  ;;  %734 = vmatprep.subr.mxu1 %v715_v18  ;;  %v705_v38 = vld [vmem:[#allocation7 + $0x3a8] sm:$0xff]  ;;  %v700_v43 = vld [vmem:[#allocation7 + $0x380] sm:$0xff] }
  0xef   :  { %v164_v52 = vadd.f32 %v162_v41, %v1543_v58  ;;  %v165_v55 = vadd.f32 %v163_v51, %v1545_v59  ;;  %v253_v58 = vld [vmem:[#allocation4 + $0x10] sm:$0xff]  ;;  %v709_v39 = vld [vmem:[#allocation7 + $0x3c8] sm:$0xff]  ;;  %v688_v44 = vld [vmem:[#allocation7 + $0x320] sm:$0xff] }
  0xf0   :  { %v237_v49 = vadd.f32 %v235_v46, %v228_v47  ;;  %v236_v50 = vadd.f32 %v234_v45, %v227_v48  ;;  %v701_v34 = vld [vmem:[#allocation7 + $0x388] sm:$0xff]  ;;  %v692_v45 = vld [vmem:[#allocation7 + $0x340] sm:$0xff]  ;;  %v687_v46 = vld [vmem:[#allocation7 + $0x318] sm:$0xff] }
  0xf1   :  { %v691_v47 = vld [vmem:[#allocation7 + $0x338] sm:$0xff]  ;;  %v682_v40 = vld [vmem:[#allocation7 + $0x2f0] sm:$0xff] }
  0xf2   :  { %242 = vrot.lane.b32.xlu1 %v237_v49, %s1440_s14  ;;  %240 = vrot.lane.b32.xlu0 %v236_v50, %s1440_s14  ;;  %s1446_s14 = smov 32   ;;  %v679_v48 = vld [vmem:[#allocation7 + $0x2d8] sm:$0xff]  ;;  %v678_v50 = vld [vmem:[#allocation7 + $0x2d0] sm:$0xff] }
  0xf3   :  { %v683_v49 = vld [vmem:[#allocation7 + $0x2f8] sm:$0xff]  ;;  %v670_v41 = vld [vmem:[#allocation7 + $0x290] sm:$0xff] }
  0xf4   :  { %v674_v51 = vld [vmem:[#allocation7 + $0x2b0] sm:$0xff] }
 0x164   :  { %v243_v53 = vpop.permute.xlu1 %242  ;;  %v241_v54 = vpop.permute.xlu0 %240 }
 0x165   :  { %v247_v56 = vsel %vm246_vm0, %v164_v52, %v241_v54  ;;  %v248_v60 = vsel %vm246_vm0, %v165_v55, %v243_v53  ;;  %v669_v52 = vld [vmem:[#allocation7 + $0x288] sm:$0xff] }
 0x166   :  { %v249_v57 = vmax.f32 %v247_v56, 0.0  ;;  %v250_v63 = vmax.f32 %v248_v60, 0.0  ;;  %v673_v53 = vld [vmem:[#allocation7 + $0x2a8] sm:$0xff]  ;;  %v660_v56 = vld [vmem:[#allocation7 + $0x240] sm:$0xff] }
 0x167   :  { %v661_v54 = vld [vmem:[#allocation7 + $0x248] sm:$0xff]  ;;  %v652_v60 = vld [vmem:[#allocation7 + $0x200] sm:$0xff] }
 0x168   :  { %1181 = vmatmul.mubr.msk.f32.vlgmr.msra.gmra.mxu0 %vm263_vm1, %v249_v57  ;;  %v665_v55 = vld [vmem:[#allocation7 + $0x268] sm:$0xff] }
 0x169   :  { %1226 = vmatpush3.msra.mxu0 %v262_v35  ;;  %340 = vmatprep.mubr.f32.mxu0 %v1445_v37  ;;  %v714_v35 = vld [vmem:[#allocation7 + $0x3f0] sm:$0xff] }
 0x16a   :  { %1227 = vmatprep.subr.mxu0 %v259_v61  ;;  %735 = vmatpush1.msra.mxu1 %v714_v35 }
 0x16b   :  { %1228 = vmatpush3.msra.mxu0 %v259_v61  ;;  %736 = vmatprep.subr.mxu1 %v706_v26  ;;  %v656_v61 = vld [vmem:[#allocation7 + $0x220] sm:$0xff] }
 0x16c   :  { %1182 = vmatmul.mubr.msk.f32.gmra.mxu0 %vm263_vm1, %v250_v63  ;;  %1229 = vmatprep.subr.mxu0 %v256_v62 }
 0x16d   :  { %1230 = vmatpush3.msra.mxu0 %v256_v62  ;;  %1233 = vmatprep.mubr.msk.f32.mxu0 %vm263_vm1, %v249_v57  ;;  %v664_v57 = vld [vmem:[#allocation7 + $0x260] sm:$0xff]  ;;  %v651_v62 = vld [vmem:[#allocation7 + $0x1f8] sm:$0xff] }
 0x16e   :  { %1231 = vmatprep.subr.mxu0 %v253_v58  ;;  %737 = vmatpush1.msra.mxu1 %v705_v38 }
 0x16f   :  { %1232 = vmatpush3.msra.mxu0 %v253_v58  ;;  %738 = vmatprep.subr.mxu1 %v697_v33  ;;  %v643_v58 = vld [vmem:[#allocation7 + $0x1b8] sm:$0xff] }
 0x170   :  { %1234 = vmatmul.mubr.msk.f32.vlgmr.msra.gmra.mxu0 %vm263_vm1, %v250_v63  ;;  %482 = vmatprep.subr.mxu0 %v1445_v37  ;;  %v655_v63 = vld [vmem:[#allocation7 + $0x218] sm:$0xff] }
 0x171   :  { %1185 = vmatprep.mubr.msk.f32.mxu0 %vm246_vm0, %v463_v3  ;;  %739 = vmatpush1.msra.mxu1 %v696_v42  ;;  %v638_v3 = vld [vmem:[#allocation7 + $0x190] sm:$0xff] }
 0x172   :  { %740 = vmatprep.subr.mxu1 %v688_v44 }
 0x173   :  { %741 = vmatpush1.msra.mxu1 %v687_v46 }
 0x174   :  { %742 = vmatprep.subr.mxu1 %v679_v48  ;;  %v731_v48 = vld [vmem:[#allocation7 + $0x478] sm:$0xff] }
 0x175   :  { %743 = vmatpush1.msra.mxu1 %v678_v50  ;;  %v717_v50 = vld [vmem:[#allocation7 + $0x408] sm:$0xff] }
 0x176   :  { %744 = vmatprep.subr.mxu1 %v670_v41  ;;  %v722_v41 = vld [vmem:[#allocation7 + $0x430] sm:$0xff] }
 0x177   :  { %745 = vmatpush1.msra.mxu1 %v669_v52  ;;  %v707_v52 = vld [vmem:[#allocation7 + $0x3b8] sm:$0xff] }
 0x178   :  { %746 = vmatprep.subr.mxu1 %v661_v54  ;;  %v699_v54 = vld [vmem:[#allocation7 + $0x378] sm:$0xff] }
 0x179   :  { %747 = vmatpush1.msra.mxu1 %v660_v56  ;;  %v704_v56 = vld [vmem:[#allocation7 + $0x3a0] sm:$0xff] }
 0x17a   :  { %748 = vmatprep.subr.mxu1 %v652_v60  ;;  %v689_v60 = vld [vmem:[#allocation7 + $0x328] sm:$0xff] }
 0x17b   :  { %749 = vmatpush1.msra.mxu1 %v651_v62  ;;  %v681_v62 = vld [vmem:[#allocation7 + $0x2e8] sm:$0xff] }
 0x17c   :  { %750 = vmatprep.subr.mxu1 %v643_v58  ;;  %v686_v58 = vld [vmem:[#allocation7 + $0x310] sm:$0xff] }
 0x228   :  { %v1578_v59 = vpop.f32.mrf.mxu0 }
 0x22a   :  { %v338_v0 = vpop.f32.mrf.mxu0 }
 0x22b   :  { %456 = vrot.lane.b32.xlu1 %v338_v0, %s1446_s14 }
 0x22c   :  { %v342_v1 = vpop.f32.mrf.mxu0 }
 0x22e   :  { %v344_v2 = vpop.f32.mrf.mxu0 }
 0x22f   :  { %450 = vrot.lane.b32.xlu1 %v338_v0, %s1447_s15  ;;  %458 = vrot.lane.b32.xlu0 %v344_v2, %s1446_s14 }
 0x230   :  { %v1235_v24 = vpop.f32.mrf.mxu0 }
 0x232   :  { %v413_v25 = vpop.f32.mrf.mxu0 }
 0x233   :  { %444 = vrot.lane.b32.xlu1 %v338_v0, %s1448_s16  ;;  %452 = vrot.lane.b32.xlu0 %v344_v2, %s1447_s15 }
 0x237   :  { %436 = vrot.lane.b32.xlu1 %v1578_v59, %s1446_s14  ;;  %446 = vrot.lane.b32.xlu0 %v344_v2, %s1448_s16 }
 0x23b   :  { %430 = vrot.lane.b32.xlu1 %v1578_v59, %s1447_s15  ;;  %438 = vrot.lane.b32.xlu0 %v342_v1, %s1446_s14 }
 0x23f   :  { %424 = vrot.lane.b32.xlu1 %v1578_v59, %s1448_s16  ;;  %432 = vrot.lane.b32.xlu0 %v342_v1, %s1447_s15 }
 0x243   :  { %426 = vrot.lane.b32.xlu0 %v342_v1, %s1448_s16 }
 0x29d   :  { %v457_v4 = vpop.permute.xlu1 %456 }
 0x2a1   :  { %v459_v5 = vpop.permute.xlu0 %458  ;;  %v451_v6 = vpop.permute.xlu1 %450 }
 0x2a2   :  { %483 = vmatpush1.msra.mxu0 %v459_v5  ;;  %v637_v5 = vld [vmem:[#allocation7 + $0x188] sm:$0xff] }
 0x2a3   :  { %484 = vmatprep.subr.mxu0 %v1445_v37 }
 0x2a4   :  { %485 = vmatpush1.msra.mxu0 %v457_v4  ;;  %v633_v4 = vld [vmem:[#allocation7 + $0x168] sm:$0xff] }
 0x2a5   :  { %486 = vmatprep.subr.mxu0 %v1445_v37  ;;  %v453_v7 = vpop.permute.xlu0 %452  ;;  %v445_v10 = vpop.permute.xlu1 %444 }
 0x2a6   :  { %487 = vmatpush1.msra.mxu0 %v453_v7  ;;  %v629_v7 = vld [vmem:[#allocation7 + $0x148] sm:$0xff] }
 0x2a7   :  { %488 = vmatprep.subr.mxu0 %v1445_v37 }
 0x2a8   :  { %489 = vmatpush1.msra.mxu0 %v451_v6  ;;  %v625_v6 = vld [vmem:[#allocation7 + $0x128] sm:$0xff] }
 0x2a9   :  { %490 = vmatprep.subr.mxu0 %v1445_v37  ;;  %v447_v13 = vpop.permute.xlu0 %446  ;;  %v437_v17 = vpop.permute.xlu1 %436 }
 0x2aa   :  { %491 = vmatpush1.msra.mxu0 %v447_v13  ;;  %v628_v13 = vld [vmem:[#allocation7 + $0x140] sm:$0xff] }
 0x2ab   :  { %492 = vmatprep.subr.mxu0 %v1445_v37 }
 0x2ac   :  { %493 = vmatpush1.msra.mxu0 %v445_v10  ;;  %v624_v10 = vld [vmem:[#allocation7 + $0x120] sm:$0xff] }
 0x2ad   :  { %494 = vmatprep.subr.mxu0 %v1445_v37  ;;  %v439_v14 = vpop.permute.xlu0 %438  ;;  %v431_v21 = vpop.permute.xlu1 %430 }
 0x2ae   :  { %495 = vmatpush1.msra.mxu0 %v344_v2  ;;  %v634_v2 = vld [vmem:[#allocation7 + $0x170] sm:$0xff] }
 0x2af   :  { %496 = vmatprep.subr.mxu0 %v1445_v37 }
 0x2b0   :  { %497 = vmatpush1.msra.mxu0 %v338_v0  ;;  %v642_v0 = vld [vmem:[#allocation7 + $0x1b0] sm:$0xff] }
 0x2b1   :  { %498 = vmatprep.subr.mxu0 %v1445_v37  ;;  %v433_v20 = vpop.permute.xlu0 %432  ;;  %v425_v23 = vpop.permute.xlu1 %424  ;;  %751 = vmatpush1.msra.mxu1 %v642_v0  ;;  %v671_v0 = vld [vmem:[#allocation7 + $0x298] sm:$0xff] }
 0x2b2   :  { %499 = vmatpush1.msra.mxu0 %v439_v14  ;;  %752 = vmatprep.subr.mxu1 %v634_v2  ;;  %v616_v14 = vld [vmem:[#allocation7 + $0xe0] sm:$0xff]  ;;  %v663_v2 = vld [vmem:[#allocation7 + $0x258] sm:$0xff] }
 0x2b3   :  { %500 = vmatprep.subr.mxu0 %v1445_v37  ;;  %753 = vmatpush1.msra.mxu1 %v633_v4  ;;  %v668_v4 = vld [vmem:[#allocation7 + $0x280] sm:$0xff] }
 0x2b4   :  { %501 = vmatpush1.msra.mxu0 %v437_v17  ;;  %754 = vmatprep.subr.mxu1 %v625_v6  ;;  %v620_v17 = vld [vmem:[#allocation7 + $0x100] sm:$0xff]  ;;  %v653_v6 = vld [vmem:[#allocation7 + $0x208] sm:$0xff] }
 0x2b5   :  { %502 = vmatprep.subr.mxu0 %v1445_v37  ;;  %v427_v22 = vpop.permute.xlu0 %426  ;;  %755 = vmatpush1.msra.mxu1 %v624_v10  ;;  %v645_v10 = vld [vmem:[#allocation7 + $0x1c8] sm:$0xff] }
 0x2b6   :  { %503 = vmatpush1.msra.mxu0 %v433_v20  ;;  %v615_v20 = vld [vmem:[#allocation7 + $0xd8] sm:$0xff]  ;;  %756 = vmatprep.subr.mxu1 %v616_v14  ;;  %v650_v14 = vld [vmem:[#allocation7 + $0x1f0] sm:$0xff] }
 0x2b7   :  { %504 = vmatprep.subr.mxu0 %v1445_v37  ;;  %757 = vmatpush1.msra.mxu1 %v615_v20  ;;  %v635_v20 = vld [vmem:[#allocation7 + $0x178] sm:$0xff] }
 0x2b8   :  { %505 = vmatpush1.msra.mxu0 %v431_v21  ;;  %v619_v21 = vld [vmem:[#allocation7 + $0xf8] sm:$0xff] }
 0x2b9   :  { %506 = vmatprep.subr.mxu0 %v1445_v37 }
 0x2ba   :  { %507 = vmatpush1.msra.mxu0 %v427_v22  ;;  %v607_v22 = vld [vmem:[#allocation7 + $0x98] sm:$0xff] }
 0x2bb   :  { %508 = vmatprep.subr.mxu0 %v1445_v37  ;;  %758 = vmatprep.subr.mxu1 %v607_v22  ;;  %v627_v22 = vld [vmem:[#allocation7 + $0x138] sm:$0xff] }
 0x2bc   :  { %509 = vmatpush1.msra.mxu0 %v425_v23  ;;  %v611_v23 = vld [vmem:[#allocation7 + $0xb8] sm:$0xff] }
 0x2bd   :  { %510 = vmatprep.subr.mxu0 %v1445_v37 }
 0x2be   :  { %511 = vmatpush1.msra.mxu0 %v342_v1  ;;  %v646_v1 = vld [vmem:[#allocation7 + $0x1d0] sm:$0xff] }
 0x2bf   :  { %512 = vmatprep.subr.mxu0 %v1445_v37 }
 0x2c0   :  { %513 = vmatpush1.msra.mxu0 %v1578_v59  ;;  %v647_v59 = vld [vmem:[#allocation7 + $0x1d8] sm:$0xff] }
 0x2c1   :  { %542 = vmatprep.subr.mxu0 %v1445_v37 }
 0x2c2   :  { %543 = vmatpush2.msra.mxu0 %v1235_v24  ;;  %v606_v24 = vld [vmem:[#allocation7 + $0x90] sm:$0xff] }
 0x2c3   :  { %544 = vmatprep.subr.mxu0 %v1445_v37  ;;  %759 = vmatpush1.msra.mxu1 %v606_v24  ;;  %v632_v24 = vld [vmem:[#allocation7 + $0x160] sm:$0xff] }
 0x2c4   :  { %545 = vmatpush2.msra.mxu0 %v413_v25  ;;  %v598_v25 = vld [vmem:[#allocation7 + $0x50] sm:$0xff] }
 0x2c5   :  { %547 = vmatmul.mubr.f32.vlgmr.msra.gmra.mxu0 %v462_v8  ;;  %874 = vmatprep.subr.mxu0 %v728_v30  ;;  %v610_v8 = vld [vmem:[#allocation7 + $0xb0] sm:$0xff]  ;;  %v592_v30 = vld [vmem:[#allocation7 + $0x20] sm:$0xff] }
 0x2c6   :  { %1186 = vmatprep.mubr.msk.f32.mxu0 %vm246_vm0, %v465_v9  ;;  %875 = vmatpush1.msra.mxu0 %v727_v32  ;;  %v602_v9 = vld [vmem:[#allocation7 + $0x70] sm:$0xff] }
 0x2c7   :  { %876 = vmatprep.subr.mxu0 %v719_v19  ;;  %760 = vmatprep.subr.mxu1 %v598_v25  ;;  %v726_v32 = vld [vmem:[#allocation7 + $0x450] sm:$0xff]  ;;  %v617_v25 = vld [vmem:[#allocation7 + $0xe8] sm:$0xff] }
 0x2c8   :  { %877 = vmatpush1.msra.mxu0 %v718_v36 }
 0x2c9   :  { %552 = vmatmul.mubr.f32.gmra.mxu0 %v464_v28  ;;  %878 = vmatprep.subr.mxu0 %v710_v27  ;;  %v597_v28 = vld [vmem:[#allocation7 + $0x48] sm:$0xff] }
 0x2ca   :  { %1187 = vmatprep.mubr.msk.f32.mxu0 %vm246_vm0, %v467_v11  ;;  %879 = vmatpush1.msra.mxu0 %v709_v39  ;;  %v601_v11 = vld [vmem:[#allocation7 + $0x68] sm:$0xff] }
 0x2cb   :  { %880 = vmatprep.subr.mxu0 %v701_v34  ;;  %761 = vmatpush1.msra.mxu1 %v597_v28  ;;  %v609_v28 = vld [vmem:[#allocation7 + $0xa8] sm:$0xff] }
 0x2cc   :  { %881 = vmatpush1.msra.mxu0 %v700_v43 }
 0x2cd   :  { %557 = vmatmul.mubr.f32.gmra.mxu0 %v466_v12  ;;  %882 = vmatprep.subr.mxu0 %v692_v45  ;;  %v589_v12 = vld [vmem:[#allocation7 + $0x8] sm:$0xff] }
 0x2ce   :  { %1188 = vmatprep.mubr.msk.f32.mxu0 %vm246_vm0, %v469_v29  ;;  %883 = vmatpush1.msra.mxu0 %v691_v47  ;;  %v593_v29 = vld [vmem:[#allocation7 + $0x28] sm:$0xff] }
 0x2cf   :  { %884 = vmatprep.subr.mxu0 %v683_v49  ;;  %762 = vmatprep.subr.mxu1 %v589_v12  ;;  %v725_v47 = vld [vmem:[#allocation7 + $0x448] sm:$0xff]  ;;  %v614_v12 = vld [vmem:[#allocation7 + $0xd0] sm:$0xff] }
 0x2d0   :  { %885 = vmatpush1.msra.mxu0 %v682_v40  ;;  %763 = vmatpush1.msra.mxu1 %v588_v16  ;;  %v716_v40 = vld [vmem:[#allocation7 + $0x400] sm:$0xff]  ;;  %v605_v16 = vld [vmem:[#allocation7 + $0x88] sm:$0xff] }
 0x2d1   :  { %562 = vmatmul.mubr.f32.gmra.mxu0 %v468_v15  ;;  %886 = vmatprep.subr.mxu0 %v674_v51  ;;  %v708_v51 = vld [vmem:[#allocation7 + $0x3c0] sm:$0xff] }
 0x2d2   :  { %938 = vmatprep.mubr.f32.mxu0 %v1445_v37  ;;  %887 = vmatpush1.msra.mxu0 %v673_v53  ;;  %v713_v53 = vld [vmem:[#allocation7 + $0x3e8] sm:$0xff] }
 0x2d3   :  { %888 = vmatprep.subr.mxu0 %v665_v55  ;;  %803 = vmatprep.subr.mxu1 %v726_v32  ;;  %v698_v55 = vld [vmem:[#allocation7 + $0x370] sm:$0xff]  ;;  %v596_v32 = vld [vmem:[#allocation7 + $0x40] sm:$0xff] }
 0x2d4   :  { %889 = vmatpush1.msra.mxu0 %v664_v57  ;;  %v690_v57 = vld [vmem:[#allocation7 + $0x330] sm:$0xff] }
 0x2d5   :  { %890 = vmatprep.subr.mxu0 %v656_v61  ;;  %v695_v61 = vld [vmem:[#allocation7 + $0x358] sm:$0xff] }
 0x2d6   :  { %891 = vmatpush1.msra.mxu0 %v655_v63  ;;  %v680_v63 = vld [vmem:[#allocation7 + $0x2e0] sm:$0xff] }
 0x2d7   :  { %892 = vmatprep.subr.mxu0 %v647_v59  ;;  %v672_v59 = vld [vmem:[#allocation7 + $0x2a0] sm:$0xff] }
 0x2d8   :  { %893 = vmatpush1.msra.mxu0 %v646_v1  ;;  %v677_v1 = vld [vmem:[#allocation7 + $0x2c8] sm:$0xff] }
 0x2d9   :  { %894 = vmatprep.subr.mxu0 %v638_v3  ;;  %v662_v3 = vld [vmem:[#allocation7 + $0x250] sm:$0xff] }
 0x2da   :  { %895 = vmatpush1.msra.mxu0 %v637_v5  ;;  %v654_v5 = vld [vmem:[#allocation7 + $0x210] sm:$0xff] }
 0x2db   :  { %896 = vmatprep.subr.mxu0 %v629_v7  ;;  %v659_v7 = vld [vmem:[#allocation7 + $0x238] sm:$0xff] }
 0x2dc   :  { %897 = vmatpush1.msra.mxu0 %v628_v13  ;;  %v644_v13 = vld [vmem:[#allocation7 + $0x1c0] sm:$0xff] }
 0x2dd   :  { %898 = vmatprep.subr.mxu0 %v620_v17  ;;  %v636_v17 = vld [vmem:[#allocation7 + $0x180] sm:$0xff] }
 0x2de   :  { %899 = vmatpush1.msra.mxu0 %v619_v21  ;;  %v641_v21 = vld [vmem:[#allocation7 + $0x1a8] sm:$0xff] }
 0x2df   :  { %900 = vmatprep.subr.mxu0 %v611_v23  ;;  %v626_v23 = vld [vmem:[#allocation7 + $0x130] sm:$0xff] }
 0x2e0   :  { %901 = vmatpush1.msra.mxu0 %v610_v8  ;;  %v618_v8 = vld [vmem:[#allocation7 + $0xf0] sm:$0xff] }
 0x2e1   :  { %902 = vmatprep.subr.mxu0 %v602_v9  ;;  %v623_v9 = vld [vmem:[#allocation7 + $0x118] sm:$0xff] }
 0x2e2   :  { %903 = vmatpush1.msra.mxu0 %v601_v11  ;;  %v608_v11 = vld [vmem:[#allocation7 + $0xa0] sm:$0xff] }
 0x2e3   :  { %904 = vmatprep.subr.mxu0 %v593_v29  ;;  %v600_v29 = vld [vmem:[#allocation7 + $0x60] sm:$0xff] }
 0x2e4   :  { %905 = vmatpush1.msra.mxu0 %v592_v30  ;;  %v591_v30 = vld [vmem:[#allocation7 + $0x18] sm:$0xff] }
 0x2e5   :  { %1236 = vmatprep.subr.mxu0 %v1445_v37 }
 0x385   :  { %v548_v15 = vpop.f32.mrf.mxu0 }
 0x386   :  { %v567_v42 = vmax.f32 %v548_v15, 0.0  ;;  %v599_v15 = vld [vmem:[#allocation7 + $0x58] sm:$0xff] }
 0x387   :  { %v550_v31 = vpop.f32.mrf.mxu0 }
 0x388   :  { %v590_v31 = vld [vmem:[#allocation7 + $0x10] sm:$0xff] }
 0x389   :  { %v553_v18 = vpop.f32.mrf.mxu0 }
 0x38a   :  { %v568_v19 = vmax.f32 %v553_v18, 0.0  ;;  %v730_v18 = vld [vmem:[#allocation7 + $0x470] sm:$0xff] }
 0x38b   :  { %v555_v35 = vpop.f32.mrf.mxu0 }
 0x38c   :  { %572 = vrot.lane.b32.xlu0 %v568_v19, %s1446_s14  ;;  %v729_v19 = vld [vmem:[#allocation7 + $0x468] sm:$0xff] }
 0x38d   :  { %v558_v36 = vpop.f32.mrf.mxu0  ;;  %v721_v35 = vld [vmem:[#allocation7 + $0x428] sm:$0xff] }
 0x38e   :  { %v569_v26 = vmax.f32 %v558_v36, 0.0  ;;  %v720_v36 = vld [vmem:[#allocation7 + $0x420] sm:$0xff] }
 0x38f   :  { %v560_v27 = vpop.f32.mrf.mxu0 }
 0x390   :  { %576 = vrot.lane.b32.xlu1 %v569_v26, %s1447_s15  ;;  %v712_v26 = vld [vmem:[#allocation7 + $0x3e0] sm:$0xff]  ;;  %v711_v27 = vld [vmem:[#allocation7 + $0x3d8] sm:$0xff] }
 0x391   :  { %v563_v38 = vpop.f32.mrf.mxu0 }
 0x392   :  { %v570_v39 = vmax.f32 %v563_v38, 0.0  ;;  %v703_v38 = vld [vmem:[#allocation7 + $0x398] sm:$0xff] }
 0x393   :  { %v565_v33 = vpop.f32.mrf.mxu0 }
 0x394   :  { %580 = vrot.lane.b32.xlu0 %v570_v39, %s1448_s16  ;;  %v702_v39 = vld [vmem:[#allocation7 + $0x390] sm:$0xff] }
 0x395   :  { %v694_v33 = vld [vmem:[#allocation7 + $0x350] sm:$0xff] }
 0x3fe   :  { %v573_v34 = vpop.permute.xlu0 %572 }
 0x3ff   :  { %v583_v44 = vsel %vm263_vm1, %v567_v42, %v573_v34  ;;  %v693_v34 = vld [vmem:[#allocation7 + $0x348] sm:$0xff] }
 0x400   :  { %v685_v42 = vld [vmem:[#allocation7 + $0x308] sm:$0xff] }
 0x402   :  { %v577_v43 = vpop.permute.xlu1 %576 }
 0x403   :  { %v585_v45 = vsel %vm584_vm2, %v583_v44, %v577_v43  ;;  %v684_v43 = vld [vmem:[#allocation7 + $0x300] sm:$0xff] }
 0x404   :  { %v676_v44 = vld [vmem:[#allocation7 + $0x2c0] sm:$0xff] }
 0x406   :  { %v581_v46 = vpop.permute.xlu0 %580 }
 0x407   :  { %v1623_v49 = vsel %vm586_vm3, %v585_v45, %v581_v46  ;;  %v675_v45 = vld [vmem:[#allocation7 + $0x2b8] sm:$0xff] }
 0x408   :  { %797 = vmatmul.mubr.f32.vlgmr.msra.gmra.mxu1 %v1623_v49  ;;  %939 = vmatmul.mubr.f32.vlgmr.msra.gmra.mxu0 %v1623_v49  ;;  %v667_v46 = vld [vmem:[#allocation7 + $0x278] sm:$0xff] }
 0x409   :  { %804 = vmatpush1.msra.mxu1 %v725_v47  ;;  %1237 = vmatpush3.msra.mxu0 %v731_v48  ;;  %v658_v47 = vld [vmem:[#allocation7 + $0x230] sm:$0xff]  ;;  %v657_v48 = vld [vmem:[#allocation7 + $0x228] sm:$0xff] }
 0x40a   :  { %805 = vmatprep.subr.mxu1 %v717_v50  ;;  %1238 = vmatprep.subr.mxu0 %v1445_v37  ;;  %v649_v50 = vld [vmem:[#allocation7 + $0x1e8] sm:$0xff] }
 0x40b   :  { %806 = vmatpush1.msra.mxu1 %v716_v40  ;;  %1239 = vmatpush3.msra.mxu0 %v722_v41  ;;  %v648_v40 = vld [vmem:[#allocation7 + $0x1e0] sm:$0xff] }
 0x40c   :  { %807 = vmatprep.subr.mxu1 %v708_v51  ;;  %1240 = vmatprep.subr.mxu0 %v1445_v37  ;;  %v640_v41 = vld [vmem:[#allocation7 + $0x1a0] sm:$0xff]  ;;  %v639_v51 = vld [vmem:[#allocation7 + $0x198] sm:$0xff] }
 0x40d   :  { %808 = vmatpush1.msra.mxu1 %v707_v52  ;;  %1241 = vmatpush3.msra.mxu0 %v713_v53  ;;  %v631_v52 = vld [vmem:[#allocation7 + $0x158] sm:$0xff]  ;;  %v630_v53 = vld [vmem:[#allocation7 + $0x150] sm:$0xff] }
 0x40e   :  { %809 = vmatprep.subr.mxu1 %v699_v54  ;;  %1242 = vmatprep.subr.mxu0 %v1445_v37  ;;  %v622_v54 = vld [vmem:[#allocation7 + $0x110] sm:$0xff] }
 0x40f   :  { %810 = vmatpush1.msra.mxu1 %v698_v55  ;;  %1243 = vmatpush3.msra.mxu0 %v704_v56  ;;  %v621_v55 = vld [vmem:[#allocation7 + $0x108] sm:$0xff] }
 0x410   :  { %811 = vmatprep.subr.mxu1 %v690_v57  ;;  %1244 = vmatprep.subr.mxu0 %v1445_v37  ;;  %v613_v56 = vld [vmem:[#allocation7 + $0xc8] sm:$0xff]  ;;  %v612_v57 = vld [vmem:[#allocation7 + $0xc0] sm:$0xff] }
 0x411   :  { %812 = vmatpush1.msra.mxu1 %v689_v60  ;;  %1245 = vmatpush3.msra.mxu0 %v695_v61  ;;  %v604_v60 = vld [vmem:[#allocation7 + $0x80] sm:$0xff]  ;;  %v603_v61 = vld [vmem:[#allocation7 + $0x78] sm:$0xff] }
 0x412   :  { %813 = vmatprep.subr.mxu1 %v681_v62  ;;  %1246 = vmatprep.subr.mxu0 %v1445_v37  ;;  %v595_v62 = vld [vmem:[#allocation7 + $0x38] sm:$0xff] }
 0x413   :  { %814 = vmatpush1.msra.mxu1 %v680_v63  ;;  %1247 = vmatpush3.msra.mxu0 %v686_v58  ;;  %v594_v63 = vld [vmem:[#allocation7 + $0x30] sm:$0xff]  ;;  %v1086_v58 = vld [vmem:[%s1667_s5] sm:$0xff] }
 0x414   :  { %815 = vmatprep.subr.mxu1 %v672_v59  ;;  %1248 = vmatprep.subr.mxu0 %v1445_v37 }
 0x415   :  { %816 = vmatpush1.msra.mxu1 %v671_v0  ;;  %1249 = vmatpush3.msra.mxu0 %v677_v1 }
 0x416   :  { %817 = vmatprep.subr.mxu1 %v663_v2  ;;  %1250 = vmatprep.subr.mxu0 %v1445_v37 }
 0x417   :  { %818 = vmatpush1.msra.mxu1 %v662_v3  ;;  %1251 = vmatpush3.msra.mxu0 %v668_v4 }
 0x418   :  { %819 = vmatprep.subr.mxu1 %v654_v5  ;;  %1252 = vmatprep.subr.mxu0 %v1445_v37 }
 0x419   :  { %820 = vmatpush1.msra.mxu1 %v653_v6  ;;  %1253 = vmatpush3.msra.mxu0 %v659_v7 }
 0x41a   :  { %821 = vmatprep.subr.mxu1 %v645_v10  ;;  %1254 = vmatprep.subr.mxu0 %v1445_v37 }
 0x41b   :  { %822 = vmatpush1.msra.mxu1 %v644_v13  ;;  %1255 = vmatpush3.msra.mxu0 %v650_v14 }
 0x41c   :  { %823 = vmatprep.subr.mxu1 %v636_v17  ;;  %1256 = vmatprep.subr.mxu0 %v1445_v37 }
 0x41d   :  { %824 = vmatpush1.msra.mxu1 %v635_v20  ;;  %1257 = vmatpush3.msra.mxu0 %v641_v21 }
 0x41e   :  { %825 = vmatprep.subr.mxu1 %v627_v22  ;;  %1258 = vmatprep.subr.mxu0 %v1445_v37 }
 0x41f   :  { %826 = vmatpush1.msra.mxu1 %v626_v23  ;;  %1259 = vmatpush3.msra.mxu0 %v632_v24 }
 0x420   :  { %827 = vmatprep.subr.mxu1 %v618_v8  ;;  %1260 = vmatprep.subr.mxu0 %v1445_v37 }
 0x421   :  { %828 = vmatpush1.msra.mxu1 %v617_v25  ;;  %1261 = vmatpush3.msra.mxu0 %v623_v9 }
 0x422   :  { %829 = vmatprep.subr.mxu1 %v609_v28  ;;  %1262 = vmatprep.subr.mxu0 %v1445_v37 }
 0x423   :  { %830 = vmatpush1.msra.mxu1 %v608_v11  ;;  %1263 = vmatpush3.msra.mxu0 %v614_v12 }
 0x424   :  { %831 = vmatprep.subr.mxu1 %v600_v29  ;;  %1264 = vmatprep.subr.mxu0 %v1445_v37 }
 0x425   :  { %832 = vmatpush1.msra.mxu1 %v599_v15  ;;  %1265 = vmatpush3.msra.mxu0 %v605_v16 }
 0x426   :  { %833 = vmatprep.subr.mxu1 %v591_v30  ;;  %1266 = vmatprep.subr.mxu0 %v1445_v37 }
 0x427   :  { %834 = vmatpush1.msra.mxu1 %v590_v31  ;;  %867 = vmatprep.mubr.f32.mxu1 %v1445_v37 }
 0x428   :  { %1267 = vmatpush3.msra.mxu0 %v596_v32  ;;  %1268 = vmatprep.mubr.msk.f32.mxu0 %vm1449_vm4, %v1445_v37 }
 0x429   :  { %868 = vmatmul.mubr.f32.vlgmr.msra.gmra.mxu1 %v1623_v49  ;;  %945 = vmatprep.subr.mxu1 %v730_v18 }
 0x42a   :  { %1269 = vmatmul.mubr.f32.vlgmr.msra.gmra.mxu0 %v1623_v49  ;;  %946 = vmatpush1.msra.mxu1 %v729_v19 }
 0x42b   :  { %947 = vmatprep.subr.mxu1 %v721_v35  ;;  %1009 = vmatprep.mubr.f32.mxu1 %v1445_v37  ;;  %v666_v37 = vld [vmem:[#allocation7 + $0x270] sm:$0xff] }
 0x42c   :  { %948 = vmatpush1.msra.mxu1 %v720_v36 }
 0x42d   :  { %949 = vmatprep.subr.mxu1 %v712_v26 }
 0x42e   :  { %950 = vmatpush1.msra.mxu1 %v711_v27 }
 0x42f   :  { %951 = vmatprep.subr.mxu1 %v703_v38 }
 0x430   :  { %952 = vmatpush1.msra.mxu1 %v702_v39 }
 0x431   :  { %953 = vmatprep.subr.mxu1 %v694_v33 }
 0x432   :  { %954 = vmatpush1.msra.mxu1 %v693_v34 }
 0x433   :  { %955 = vmatprep.subr.mxu1 %v685_v42 }
 0x434   :  { %956 = vmatpush1.msra.mxu1 %v684_v43 }
 0x435   :  { %957 = vmatprep.subr.mxu1 %v676_v44 }
 0x436   :  { %958 = vmatpush1.msra.mxu1 %v675_v45 }
 0x437   :  { %959 = vmatprep.subr.mxu1 %v667_v46 }
 0x438   :  { %960 = vmatpush1.msra.mxu1 %v666_v37 }
 0x439   :  { %961 = vmatprep.subr.mxu1 %v658_v47 }
 0x43a   :  { %962 = vmatpush1.msra.mxu1 %v657_v48 }
 0x43b   :  { %963 = vmatprep.subr.mxu1 %v649_v50 }
 0x43c   :  { %964 = vmatpush1.msra.mxu1 %v648_v40 }
 0x43d   :  { %965 = vmatprep.subr.mxu1 %v640_v41 }
 0x43e   :  { %966 = vmatpush1.msra.mxu1 %v639_v51 }
 0x43f   :  { %967 = vmatprep.subr.mxu1 %v631_v52 }
 0x440   :  { %968 = vmatpush1.msra.mxu1 %v630_v53 }
 0x441   :  { %969 = vmatprep.subr.mxu1 %v622_v54 }
 0x442   :  { %970 = vmatpush1.msra.mxu1 %v621_v55 }
 0x443   :  { %971 = vmatprep.subr.mxu1 %v613_v56 }
 0x444   :  { %972 = vmatpush1.msra.mxu1 %v612_v57 }
 0x445   :  { %973 = vmatprep.subr.mxu1 %v604_v60 }
 0x446   :  { %974 = vmatpush1.msra.mxu1 %v603_v61 }
 0x447   :  { %975 = vmatprep.subr.mxu1 %v595_v62 }
 0x448   :  { %976 = vmatpush1.msra.mxu1 %v594_v63 }
 0x449   :  { %1010 = vmatmul.mubr.f32.vlgmr.msra.gmra.mxu1 %v1623_v49  ;;  %v1087_v49 = vld [vmem:[%s1667_s5 + $0x8] sm:$0xf] }
 0x44a   :  { %1289 = vmatprep.mubr.msk.f32.mxu1 %vm1088_vm5, %v1086_v58 }
 0x4c8   :  { %v940_v59 = vpop.f32.mrf.mxu0  ;;  %v798_v3 = vpop.f32.mrf.mxu1 }
 0x4ca   :  { %v942_v0 = vpop.f32.mrf.mxu0  ;;  %v800_v4 = vpop.f32.mrf.mxu1 }
 0x4e9   :  { %v869_v5 = vpop.f32.mrf.mxu1 }
 0x4ea   :  { %v1082_v1 = vpop.f32.mrf.mxu0 }
 0x4eb   :  { %1271 = vmatprep.subr.mxu1 %v1082_v1  ;;  %v871_v6 = vpop.f32.mrf.mxu1 }
 0x4ec   :  { %v1270_v2 = vpop.f32.mrf.mxu0  ;;  %1272 = vmatpush3.msra.mxu1 %v1082_v1 }
 0x509   :  { %v1011_v7 = vpop.f32.mrf.mxu1 }
 0x50b   :  { %v1013_v10 = vpop.f32.mrf.mxu1 }
 0x50c   :  { %1273 = vmatprep.subr.mxu1 %v1013_v10 }
 0x50d   :  { %1274 = vmatpush3.msra.mxu1 %v1013_v10 }
 0x50e   :  { %1275 = vmatprep.subr.mxu1 %v1011_v7 }
 0x50f   :  { %1276 = vmatpush3.msra.mxu1 %v1011_v7 }
 0x510   :  { %1277 = vmatprep.subr.mxu1 %v942_v0 }
 0x511   :  { %1278 = vmatpush3.msra.mxu1 %v942_v0 }
 0x512   :  { %1279 = vmatprep.subr.mxu1 %v940_v59 }
 0x513   :  { %1280 = vmatpush3.msra.mxu1 %v940_v59 }
 0x514   :  { %1281 = vmatprep.subr.mxu1 %v871_v6 }
 0x515   :  { %1282 = vmatpush3.msra.mxu1 %v871_v6 }
 0x516   :  { %1283 = vmatprep.subr.mxu1 %v869_v5 }
 0x517   :  { %1284 = vmatpush3.msra.mxu1 %v869_v5 }
 0x518   :  { %1285 = vmatprep.subr.mxu1 %v800_v4 }
 0x519   :  { %1286 = vmatpush3.msra.mxu1 %v800_v4 }
 0x51a   :  { %1287 = vmatprep.subr.mxu1 %v798_v3 }
 0x51b   :  { %1288 = vmatpush3.msra.mxu1 %v798_v3 }
 0x51c   :  { %1290 = vmatmul.mubr.msk.f32.vlgmr.msra.gmra.mxu1 %vm1088_vm5, %v1087_v49 }
 0x5dc   :  { %v1291_v13 = vpop.f32.mrf.mxu1 }
 0x5dd   :  { %1342 = vtanh.f32 %v1291_v13 }
 0x5de   :  { %v1161_v14 = vpop.f32.mrf.mxu1 }
 0x5df   :  { %1344 = vtanh.f32 %v1161_v14 }
 0x5ea   :  { %v1343_v17 = vpop.eup %1342 }
 0x5eb   :  { %1173 = vst [vmem:[%s1668_s6 + $0x8] sm:$0xf] %v1343_v17 }
 0x5ec   :  { %v1345_v20 = vpop.eup %1344 }
 0x5ed   :  { %1172 = vst [vmem:[%s1668_s6] sm:$0xff] %v1345_v20 }
 0x5ee   :  { %1178 = vsyncpa [#allocation3], 1 }
 0x5ef   :  { %1179 = vsyncpa [#allocation5], 1 }
 0x5f0   :  { %1180 = vsyncpa [#allocation8], 1 }

</bundles_post_ra>
